<compile_context>
chip_gen: v6e
topology: v6e:2x2x1
jax: 0.10.0
libtpu: 0.0.40
codegen_flags: <defaults>
</compile_context>

<pallas_src>
import numpy as np
import jax
import jax.numpy as jnp
from jax.experimental import pallas as pl
from jax.experimental.pallas import tpu as pltpu

HIDDEN = 32
# Multiple of 128.  Live VMEM per step ~ (x + out double-buffered) + h1 + h2
# = 32768*(4+4)*2 B + 2*32*32768*4 B ~ 8.6 MiB  -> fits v5e/v6e/v7x scoped VMEM.
MAX_TILE_N = 32768


def mlp_kernel(x_ref, w1_ref, b1_ref, w2t_ref, b2_ref, w3_ref, b3_ref, o_ref):
    x_row = x_ref[...]                                           # (1, TILE_N)
    # Layer 1: K=1 contraction -> VPU outer-product broadcast (no MXU).
    h1 = jnp.maximum(w1_ref[...] * x_row + b1_ref[...], 0.0)     # (H, TILE_N)
    # Layer 2: the only real contraction (32x32) -> MXU, f32 accumulate.
    h2 = jnp.dot(w2t_ref[...], h1, preferred_element_type=jnp.float32)
    h2 = jnp.maximum(h2 + b2_ref[...], 0.0)                      # (H, TILE_N)
    # Layer 3: output width 1 -> (1,H) @ (H,TILE_N) on the MXU.
    out = jnp.dot(w3_ref[...], h2, preferred_element_type=jnp.float32)
    o_ref[...] = out + b3_ref[0]                                 # (1, TILE_N)


def prepare_params(params):
    """Reshape params once into the lane-major kernel layout."""
    return {
        "w1": params["w1"].reshape(HIDDEN, 1).astype(jnp.float32),   # (H, 1) column
        "b1": params["b1"].reshape(HIDDEN, 1).astype(jnp.float32),   # (H, 1)
        "w2t": params["w2"].T.astype(jnp.float32),                   # (H, H): h2 = w2^T @ h1
        "b2": params["b2"].reshape(HIDDEN, 1).astype(jnp.float32),   # (H, 1)
        "w3": params["w3"].reshape(1, HIDDEN).astype(jnp.float32),   # (1, H) row (== w3.T)
        "b3": params["b3"].reshape(1).astype(jnp.float32),           # (1,) scalar -> SMEM
    }


def _choose_tile_n(n):
    """Lane-aligned row tile (multiple of 128); >=2 grid steps when possible
    so v7x's two TensorCores both get work; capped for VMEM on all gens."""
    if n <= 256:
        return 128
    if n <= 2 * MAX_TILE_N:
        half = (n + 1) // 2
        return ((half + 127) // 128) * 128
    return MAX_TILE_N


def _forward_impl(x, p):
    n = x.shape[0]
    # (n, 1) -> (1, n) is a contiguous reshape: no extra HBM pass.
    x_row = x.reshape(1, n).astype(jnp.float32)

    tile_n = _choose_tile_n(n)
    grid = (pl.cdiv(n, tile_n),)   # ragged last block handled by Pallas

    out_row = pl.pallas_call(
        mlp_kernel,
        out_shape=jax.ShapeDtypeStruct((1, n), jnp.float32),
        grid_spec=pltpu.PrefetchScalarGridSpec(
            num_scalar_prefetch=0,
            grid=grid,
            in_specs=[
                pl.BlockSpec((1, tile_n), lambda i: (0, i)),           # x row tile
                pl.BlockSpec((HIDDEN, 1), lambda i: (0, 0)),           # w1 column
                pl.BlockSpec((HIDDEN, 1), lambda i: (0, 0)),           # b1 column
                pl.BlockSpec((HIDDEN, HIDDEN), lambda i: (0, 0)),      # w2^T
                pl.BlockSpec((HIDDEN, 1), lambda i: (0, 0)),           # b2 column
                pl.BlockSpec((1, HIDDEN), lambda i: (0, 0)),           # w3 row
                pl.BlockSpec(memory_space=pltpu.MemorySpace.SMEM),     # b3 scalar
            ],
            out_specs=pl.BlockSpec((1, tile_n), lambda i: (0, i)),
        ),
        compiler_params=pltpu.CompilerParams(
            dimension_semantics=("parallel",),
        ),
    )(x_row, p["w1"], p["b1"], p["w2t"], p["b2"], p["w3"], p["b3"])

    # (1, n) -> (n, 1) is again a contiguous reshape (free).
    return out_row.reshape(n, 1)


sinenet_forward = jax.jit(_forward_impl)


def init_params(key, hidden=HIDDEN):
    """Deterministic init mimicking PyTorch Linear default (uniform +/- 1/sqrt(fan_in)).
    Weights stored as (in_features, out_features)."""
    ks = jax.random.split(key, 6)

    def lin(kw, kb, fan_in, fan_out):
        bound = 1.0 / np.sqrt(fan_in)
        w = jax.random.uniform(kw, (fan_in, fan_out), jnp.float32, -bound, bound)
        b = jax.random.uniform(kb, (fan_out,), jnp.float32, -bound, bound)
        return w, b

    w1, b1 = lin(ks[0], ks[1], 1, hidden)
    w2, b2 = lin(ks[2], ks[3], hidden, hidden)
    w3, b3 = lin(ks[4], ks[5], hidden, 1)
    return {"w1": w1, "b1": b1, "w2": w2, "b2": b2, "w3": w3, "b3": b3}


def reference_forward(x, p):
    h1 = jnp.maximum(x @ p["w1"] + p["b1"], 0.0)
    h2 = jnp.maximum(h1 @ p["w2"] + p["b2"], 0.0)
    return h2 @ p["w3"] + p["b3"]


if __name__ == "__main__":
    key = jax.random.PRNGKey(0)
    params = init_params(key)
    prepped = prepare_params(params)   # hoisted: done once, not per forward call

    # Same input as the PyTorch script: 200 points in [-2pi, 2pi], shape (200, 1)
    x = jnp.linspace(-2 * np.pi, 2 * np.pi, 200, dtype=jnp.float32).reshape(-1, 1)

    out = sinenet_forward(x, prepped)
    out = jax.block_until_ready(out)

    ref = reference_forward(x, params)
    assert out.shape == (200, 1), out.shape
    np.testing.assert_allclose(np.asarray(out), np.asarray(ref), rtol=1e-5, atol=1e-5)

    print("KERNEL_OK")
</pallas_src>

<mosaic_0001>
module attributes {stable_mosaic.version = 11 : i64} {
  func.func @mlp_kernel(%arg0: i32, %arg1: memref<1x128xf32, #tpu.memory_space<vmem>>, %arg2: memref<32x1xf32, #tpu.memory_space<vmem>>, %arg3: memref<32x1xf32, #tpu.memory_space<vmem>>, %arg4: memref<32x32xf32, #tpu.memory_space<vmem>>, %arg5: memref<32x1xf32, #tpu.memory_space<vmem>>, %arg6: memref<1x32xf32, #tpu.memory_space<vmem>>, %arg7: memref<1xf32, #tpu.memory_space<smem>>, %arg8: memref<1x128xf32, #tpu.memory_space<vmem>>) attributes {dimension_semantics = [#tpu.dimension_semantics<parallel>], iteration_bounds = array<i64: 2>, scalar_prefetch = 0 : i64, scratch_operands = 0 : i64, tpu.core_type = #tpu.core_type<tc>, window_params = [{transform_indices = @transform_0, window_bounds = array<i64: 1, 128>}, {pipeline_mode = #tpu.pipeline_mode<synchronous>, transform_indices = @transform_1, window_bounds = array<i64: 32, 1>}, {pipeline_mode = #tpu.pipeline_mode<synchronous>, transform_indices = @transform_2, window_bounds = array<i64: 32, 1>}, {pipeline_mode = #tpu.pipeline_mode<synchronous>, transform_indices = @transform_3, window_bounds = array<i64: 32, 32>}, {pipeline_mode = #tpu.pipeline_mode<synchronous>, transform_indices = @transform_4, window_bounds = array<i64: 32, 1>}, {pipeline_mode = #tpu.pipeline_mode<synchronous>, transform_indices = @transform_5, window_bounds = array<i64: 1, 32>}, {transform_indices = @transform_6, window_bounds = array<i64: 1>}, {transform_indices = @transform_7, window_bounds = array<i64: 1, 128>}]} {
    %c0 = arith.constant 0 : index
    %c0_0 = arith.constant 0 : index
    %0 = vector.load %arg1[%c0, %c0_0] : memref<1x128xf32, #tpu.memory_space<vmem>>, vector<1x128xf32>
    %c0_1 = arith.constant 0 : index
    %c0_2 = arith.constant 0 : index
    %1 = vector.load %arg2[%c0_1, %c0_2] : memref<32x1xf32, #tpu.memory_space<vmem>>, vector<32x1xf32>
    %2 = vector.broadcast %1 : vector<32x1xf32> to vector<32x128xf32>
    %3 = vector.broadcast %0 : vector<1x128xf32> to vector<32x128xf32>
    %4 = arith.mulf %2, %3 : vector<32x128xf32>
    %c0_3 = arith.constant 0 : index
    %c0_4 = arith.constant 0 : index
    %5 = vector.load %arg3[%c0_3, %c0_4] : memref<32x1xf32, #tpu.memory_space<vmem>>, vector<32x1xf32>
    %6 = vector.broadcast %5 : vector<32x1xf32> to vector<32x128xf32>
    %7 = arith.addf %4, %6 : vector<32x128xf32>
    %cst = arith.constant 0.000000e+00 : f32
    %8 = vector.broadcast %cst : f32 to vector<32x128xf32>
    %9 = arith.maximumf %7, %8 : vector<32x128xf32>
    %c0_5 = arith.constant 0 : index
    %c0_6 = arith.constant 0 : index
    %10 = vector.load %arg4[%c0_5, %c0_6] : memref<32x32xf32, #tpu.memory_space<vmem>>, vector<32x32xf32>
    %cst_7 = arith.constant dense<0.000000e+00> : vector<32x128xf32>
    %11 = tpu.matmul %10, %9, %cst_7 {dimension_numbers = #tpu.dot_dimension_numbers<[1], [0], [0], [1], [0, 0, 1, 1], [], []>} : vector<32x32xf32>, vector<32x128xf32>, vector<32x128xf32> -> vector<32x128xf32>
    %c0_8 = arith.constant 0 : index
    %c0_9 = arith.constant 0 : index
    %12 = vector.load %arg5[%c0_8, %c0_9] : memref<32x1xf32, #tpu.memory_space<vmem>>, vector<32x1xf32>
    %13 = vector.broadcast %12 : vector<32x1xf32> to vector<32x128xf32>
    %14 = arith.addf %11, %13 : vector<32x128xf32>
    %cst_10 = arith.constant 0.000000e+00 : f32
    %15 = vector.broadcast %cst_10 : f32 to vector<32x128xf32>
    %16 = arith.maximumf %14, %15 : vector<32x128xf32>
    %c0_11 = arith.constant 0 : index
    %c0_12 = arith.constant 0 : index
    %17 = vector.load %arg6[%c0_11, %c0_12] : memref<1x32xf32, #tpu.memory_space<vmem>>, vector<1x32xf32>
    %cst_13 = arith.constant dense<0.000000e+00> : vector<1x128xf32>
    %18 = tpu.matmul %17, %16, %cst_13 {dimension_numbers = #tpu.dot_dimension_numbers<[1], [0], [0], [1], [0, 0, 1, 1], [], []>} : vector<1x32xf32>, vector<32x128xf32>, vector<1x128xf32> -> vector<1x128xf32>
    %c0_14 = arith.constant 0 : index
    %19 = memref.load %arg7[%c0_14] : memref<1xf32, #tpu.memory_space<smem>>
    %20 = vector.broadcast %19 : f32 to vector<1x128xf32>
    %21 = arith.addf %18, %20 : vector<1x128xf32>
    %c0_15 = arith.constant 0 : index
    %c0_16 = arith.constant 0 : index
    %22 = vector.load %arg8[%c0_15, %c0_16] : memref<1x128xf32, #tpu.memory_space<vmem>>, vector<1x128xf32>
    tpu.vector_store %arg8[%c0_15, %c0_16], %21 {strides = array<i32>} : memref<1x128xf32, #tpu.memory_space<vmem>>, vector<1x128xf32>,
    return
  }
  func.func @transform_0(%arg0: i32) -> (i32, i32) {
    %c0_i32 = arith.constant 0 : i32
    %c0_i32_0 = arith.constant 0 : i32
    return %c0_i32, %arg0 : i32, i32
  }
  func.func @transform_1(%arg0: i32) -> (i32, i32) {
    %c0_i32 = arith.constant 0 : i32
    %c0_i32_0 = arith.constant 0 : i32
    %c0_i32_1 = arith.constant 0 : i32
    return %c0_i32, %c0_i32_0 : i32, i32
  }
  func.func @transform_2(%arg0: i32) -> (i32, i32) {
    %c0_i32 = arith.constant 0 : i32
    %c0_i32_0 = arith.constant 0 : i32
    %c0_i32_1 = arith.constant 0 : i32
    return %c0_i32, %c0_i32_0 : i32, i32
  }
  func.func @transform_3(%arg0: i32) -> (i32, i32) {
    %c0_i32 = arith.constant 0 : i32
    %c0_i32_0 = arith.constant 0 : i32
    %c0_i32_1 = arith.constant 0 : i32
    return %c0_i32, %c0_i32_0 : i32, i32
  }
  func.func @transform_4(%arg0: i32) -> (i32, i32) {
    %c0_i32 = arith.constant 0 : i32
    %c0_i32_0 = arith.constant 0 : i32
    %c0_i32_1 = arith.constant 0 : i32
    return %c0_i32, %c0_i32_0 : i32, i32
  }
  func.func @transform_5(%arg0: i32) -> (i32, i32) {
    %c0_i32 = arith.constant 0 : i32
    %c0_i32_0 = arith.constant 0 : i32
    %c0_i32_1 = arith.constant 0 : i32
    return %c0_i32, %c0_i32_0 : i32, i32
  }
  func.func @transform_6(%arg0: i32) -> i32 {
    %c0_i32 = arith.constant 0 : i32
    %c0_i32_0 = arith.constant 0 : i32
    return %c0_i32 : i32
  }
  func.func @transform_7(%arg0: i32) -> (i32, i32) {
    %c0_i32 = arith.constant 0 : i32
    %c0_i32_0 = arith.constant 0 : i32
    return %c0_i32, %arg0 : i32, i32
  }
}

</mosaic_0001>

<bundles_post_ra>
// kernel: _forward_impl.1
= control target key start
LH: loop header
LB: loop body
LE: loop exit
PB: predicated region body
PF: predicated region fallthrough
CT: control target
= control target key end

     0   :  { %s963_s0 = inlined_call_operand.vmem [shape: f32[1,200], index: 0, kind: input, shape index: {}]   ;;  %s964_s1 = inlined_call_operand.vmem [shape: f32[32,1], index: 1, kind: input, shape index: {}]   ;;  %s965_s2 = inlined_call_operand.vmem [shape: f32[32,1], index: 2, kind: input, shape index: {}]   ;;  %s966_s3 = inlined_call_operand.vmem [shape: f32[32,32], index: 3, kind: input, shape index: {}]   ;;  %s967_s4 = inlined_call_operand.vmem [shape: f32[32,1], index: 4, kind: input, shape index: {}]   ;;  %s968_s5 = inlined_call_operand.vmem [shape: f32[1,32], index: 5, kind: input, shape index: {}]   ;;  %s969_s6 = inlined_call_operand.<no memory space> [shape: f32[1], index: 6, kind: input, shape index: {}]   ;;  %s970_s7 = inlined_call_operand.hbm [shape: f32[1,200], index: 7, kind: output, shape index: {}]  }
   0x1   :  { %12 = sst [smem:[#allocation2]] %s969_s6 }
   0x2   :  { %13 = vsyncpa [#allocation4], 0 }
   0x3   :  { %15 = vsyncpa [#allocation4 + $0x1], 0  ;;  %s814_s26 = smov 0   ;;  %s816_s27 = smov 0  }
   0x4   :  { %s818_s28 = smov 0   ;;  %s820_s29 = smov 0  }
   0x5 LB: > { %s835_s6 = sadd.s32 4294967295, %s765_s29   ;;  %s610_s30 = sadd.s32 4294967294, %s765_s29   ;;  %s765_s29 = sphi %s820_s29, %s976_s29   ;;  %s761_s28 = sphi %s818_s28, %s975_s28   ;;  %s757_s27 = sphi %s816_s27, %s974_s27   ;;  %s753_s26 = sphi %s814_s26, %s973_s26  }
   0x6   : > { %s839_s8 = sadd.s32 1, %s765_s29   ;;  %s180_s9 = sadd.s32 1, %s761_s28 }
   0x7   : > { %s177_s10 = ssub.s32 %s765_s29, %s839_s8  ;;  %p190_p0 = scmp.ne.s32.totalorder %s761_s28, %s757_s27 }
   0x8   : > { %p178_p1 = scmp.eq.s32.totalorder %s177_s10, 0  ;;  %p191_p2 = scmp.eq.s32.totalorder %s835_s6, 1 }
   0x9   : > { %p196_p3 = scmp.ne.s32.totalorder %s757_s27, %s753_s26  ;;  %p197_p4 = scmp.eq.s32.totalorder %s610_s30, 1 }
   0xa   : > { %s850_s11 = scalar_select %p178_p1, %s761_s28, %s180_s9  }
   0xb   : > { %p852_p5 = por %p191_p2, %p190_p0  ;;  %p856_p6 = por %p197_p4, %p196_p3 }
   0xc   : > { %p613_p7 = scmp.ge.s32.totalorder %s765_s29, 1  ;;  %p239_p8 = scmp.lt.s32.totalorder %s765_s29, 3 }
   0xe   : > { %p240_p9 = pnand %p613_p7, %p239_p8 }
   0xf   : > { %p268_p10 = scmp.lt.s32.totalorder (!%p240_p9), %s835_s6, 1  ;;  %s469_s22 = sld [smem:[#allocation2]] (!%p240_p9) }
  0x10   : > { %243 = sbr.rel (%p240_p9) target bundleno = 583 (0x247), region = 48  ;;  %s266_s23 = sand.u32 (!%p240_p9), 1, %s757_s27  }
  0x11   : > { %s620_s24 = sshll.u32 (!%p240_p9), %s835_s6, 4  ;;  %s546_s15 = scalar_lea.sflag (!%p240_p9), [#allocation4], %s266_s23 }
  0x12   : > { %s928_s14 = scalar_lea.hbm (!%p240_p9), %s970_s7, %s620_s24  ;;  %s770_s17 = smov (!%p240_p9), [#allocation3]  }
  0x15   : > { %v309_v0 = vld [vmem:[%s965_s2 + $0x18] sm:$0xff]  ;;  %v767_v2 = vmov 0   ;;  %v274_v3 = vld [vmem:[%s964_s1 + $0x10] sm:$0xff]  ;;  %v273_v4 = vld [vmem:[%s964_s1 + $0x8] sm:$0xff]  ;;  %vm366_vm0 = vcmask 261120   ;;  %s269_s25 = scalar_select %p268_p10, %s835_s6, 1  ;;  %v470_v56 = vstv %s469_s22 }
  0x16   : > { %v275_v1 = vld [vmem:[%s964_s1 + $0x18] sm:$0xff]  ;;  %704 = vset.pattern.permute.xlu1 %v767_v2  ;;  %703 = vset.pattern.permute.xlu0 %v767_v2  ;;  %v308_v5 = vld [vmem:[%s965_s2 + $0x10] sm:$0xff]  ;;  %v272_v6 = vld [vmem:[%s964_s1] sm:$0xff]  ;;  %v768_v38 = vmov 0.0   ;;  %vm769_vm1 = vmmov 0   ;;  %s709_s6 = sshll.u32 %s770_s17, 4  ;;  %s710_s6 = int_to_ptr.vmem [resolvable:$false] %s709_s6 }
  0x17   : > { %327 = vperm.xlu1 %704, %v309_v0   ;;  %293 = vperm.xlu0 %703, %v275_v1   ;;  %v307_v7 = vld [vmem:[%s965_s2 + $0x8] sm:$0xff]  ;;  %v306_v8 = vld [vmem:[%s965_s2] sm:$0xff]  ;;  %v345_v9 = vld [vmem:[%s967_s4 + $0x18] sm:$0xff]  ;;  %s270_s10 = scalar_lea.vmem %s963_s0, %s269_s25  ;;  %s267_s25 = scalar_lea.vmem [#allocation3], %s266_s23 }
  0x18   : > { %v344_v10 = vld [vmem:[%s967_s4 + $0x10] sm:$0xff]  ;;  %v338_v11 = vld [vmem:[%s966_s3] sm:$0xff]  ;;  %v343_v12 = vld [vmem:[%s967_s4 + $0x8] sm:$0xff]  ;;  %650 = vmatprep.subr.mxu1 %v768_v38  ;;  %658 = vmatprep.mubr.msk.f32.mxu1 %vm769_vm1, %v768_v38  ;;  %s558_s30 = sshll.u32 %s267_s25, 4  ;;  %s711_s18 = scalar_lea.vmem %s710_s6, 32  ;;  %s559_s30 = int_to_ptr.vmem [resolvable:$true] %s558_s30 }
  0x19   : > { %644 = vmatprep.mubr.msk.f32.mxu0 %vm366_vm0, %v338_v11  ;;  %v342_v13 = vld [vmem:[%s967_s4] sm:$0xff]  ;;  %v339_v35 = vld [vmem:[%s966_s3 + $0x8] sm:$0xff]  ;;  %v340_v36 = vld [vmem:[%s966_s3 + $0x10] sm:$0xff]  ;;  %s705_s16 = scalar_lea.vmem %s559_s30, 16  ;;  %p712_p0 = scmp.lt.s32.totalorder %s559_s30, %s710_s6 }
  0x1a   : > { %v614_v14 = vld [vmem:[%s270_s10] ss:$0 sm:$0xff]  ;;  %v341_v37 = vld [vmem:[%s966_s3 + $0x18] sm:$0xff]  ;;  %p706_p11 = scmp.ne.s32.totalorder %s559_s30, %s705_s16  ;;  %p713_p1 = scmp.lt.s32.totalorder %s711_s18, %s705_s16 }
  0x1b   : > { %288 = vperm.xlu0 %703, %v274_v3   ;;  %283 = vperm.xlu1 %704, %v273_v4   ;;  %v468_v55 = vld [vmem:[%s968_s5] sm:$0x1] }
  0x1c   : > { %p707_p12 = pnand %p706_p11, %p852_p5  ;;  %p714_p2 = por %p713_p1, %p712_p0 }
  0x1e   : > { %p708_p13 = pneg %p707_p12 }
  0x1f   : > { %322 = vperm.xlu0 %703, %v308_v5   ;;  %278 = vperm.xlu1 %704, %v272_v6  }
  0x20   : > { %p715_p3 = pnand %p714_p2, %p708_p13 }
  0x23   : > { %317 = vperm.xlu0 %703, %v307_v7   ;;  %312 = vperm.xlu1 %704, %v306_v8  }
  0x27   : > { %363 = vperm.xlu0 %703, %v345_v9   ;;  %358 = vperm.xlu1 %704, %v344_v10  }
  0x2b   : > { %353 = vperm.xlu0 %703, %v343_v12   ;;  %348 = vperm.xlu1 %704, %v342_v13  }
  0x92   : > { %v328_v15 = vpop.permute.xlu1 %327  ;;  %v294_v16 = vpop.permute.xlu0 %293 }
  0x93   : > { %v305_v17 = vmul.f32 %v614_v14, %v294_v16 }
  0x95   : > { %v333_v18 = vadd.f32 %v328_v15, %v305_v17 }
  0x96   : > { %v289_v19 = vpop.permute.xlu0 %288  ;;  %v284_v20 = vpop.permute.xlu1 %283 }
  0x97   : > { %v337_v21 = vmax.f32 %v333_v18, 0.0  ;;  %v304_v22 = vmul.f32 %v614_v14, %v289_v19  ;;  %v303_v26 = vmul.f32 %v614_v14, %v284_v20 }
  0x99   : > { %636 = vmatprep.subr.mxu0 %v337_v21 }
  0x9a   : > { %v323_v23 = vpop.permute.xlu0 %322  ;;  %v279_v24 = vpop.permute.xlu1 %278  ;;  %637 = vmatpush3.msra.mxu0 %v337_v21 }
  0x9b   : > { %v332_v25 = vadd.f32 %v323_v23, %v304_v22  ;;  %v302_v28 = vmul.f32 %v614_v14, %v279_v24 }
  0x9d   : > { %v336_v27 = vmax.f32 %v332_v25, 0.0 }
  0x9e   : > { %v318_v29 = vpop.permute.xlu0 %317  ;;  %v313_v30 = vpop.permute.xlu1 %312 }
  0x9f   : > { %v331_v31 = vadd.f32 %v318_v29, %v303_v26  ;;  %v330_v32 = vadd.f32 %v313_v30, %v302_v28  ;;  %638 = vmatprep.subr.mxu0 %v336_v27 }
  0xa0   : > { %639 = vmatpush3.msra.mxu0 %v336_v27 }
  0xa1   : > { %v335_v33 = vmax.f32 %v331_v31, 0.0  ;;  %v334_v34 = vmax.f32 %v330_v32, 0.0 }
  0xa2   : > { %v364_v39 = vpop.permute.xlu0 %363  ;;  %v359_v41 = vpop.permute.xlu1 %358 }
  0xa3   : > { %640 = vmatprep.subr.mxu0 %v335_v33 }
  0xa4   : > { %641 = vmatpush3.msra.mxu0 %v335_v33 }
  0xa5   : > { %642 = vmatprep.subr.mxu0 %v334_v34 }
  0xa6   : > { %643 = vmatpush3.msra.mxu0 %v334_v34  ;;  %v354_v45 = vpop.permute.xlu0 %353  ;;  %v349_v50 = vpop.permute.xlu1 %348 }
  0xa7   : > { %645 = vmatmul.mubr.msk.f32.vlgmr.msra.gmra.mxu0 %vm366_vm0, %v339_v35 }
  0xa8   : > { %647 = vmatprep.mubr.msk.f32.mxu0 %vm366_vm0, %v340_v36 }
  0xab   : > { %648 = vmatmul.mubr.msk.f32.gmra.mxu0 %vm366_vm0, %v341_v37 }
 0x167   : > { %v646_v40 = vpop.f32.mrf.mxu0 }
 0x168   : > { %v451_v47 = vadd.f32 %v646_v40, %v354_v45 }
 0x169   : > { %v445_v42 = vpop.f32.mrf.mxu0 }
 0x16a   : > { %v446_v51 = vadd.f32 %v445_v42, %v349_v50  ;;  %v465_v53 = vmax.f32 %v451_v47, 0.0 }
 0x16b   : > { %v649_v43 = vpop.f32.mrf.mxu0 }
 0x16c   : > { %v461_v44 = vadd.f32 %v649_v43, %v364_v39  ;;  %v464_v54 = vmax.f32 %v446_v51, 0.0 }
 0x16d   : > { %v455_v46 = vpop.f32.mrf.mxu0 }
 0x16e   : > { %v467_v48 = vmax.f32 %v461_v44, 0.0  ;;  %v456_v49 = vadd.f32 %v455_v46, %v359_v41 }
 0x170   : > { %v466_v52 = vmax.f32 %v456_v49, 0.0  ;;  %651 = vmatpush3.msra.mxu1 %v467_v48 }
 0x171   : > { %652 = vmatprep.subr.mxu1 %v768_v38 }
 0x172   : > { %653 = vmatpush3.msra.mxu1 %v466_v52 }
 0x173   : > { %654 = vmatprep.subr.mxu1 %v768_v38 }
 0x174   : > { %655 = vmatpush3.msra.mxu1 %v465_v53 }
 0x175   : > { %656 = vmatprep.subr.mxu1 %v768_v38 }
 0x176   : > { %657 = vmatpush3.msra.mxu1 %v464_v54 }
 0x177   : > { %659 = vmatmul.mubr.msk.f32.vlgmr.msra.gmra.mxu1 %vm366_vm0, %v468_v55 }
 0x237   : > { %v540_v57 = vpop.f32.mrf.mxu1 }
 0x238   : > { %v541_v58 = vadd.f32 %v540_v57, %v470_v56 }
 0x239   : > { %v660_v59 = vpop.f32.mrf.mxu1 }
 0x23a   : > { %544 = vst [vmem:[%s267_s25] sm:$0x1] %v541_v58 }
 0x23b   : > { %718 = shalt.err (!%p715_p3)
}
 0x23c   : > { %s719_s19 = scalar_lea.hbm %s928_s14, 16  ;;  %s723_s22 = scalar_lea.hbm %s970_s7, 32 }
 0x23d   : > { %p720_p4 = scmp.ne.s32.totalorder %s928_s14, %s719_s19  ;;  %p724_p9 = scmp.lt.s32.totalorder %s928_s14, %s970_s7 }
 0x23e   : > { %p725_p10 = scmp.lt.s32.totalorder %s723_s22, %s719_s19 }
 0x23f   : > { %p721_p7 = pnand %p720_p4, %p852_p5 }
 0x240   : > { %p726_p11 = por %p725_p10, %p724_p9 }
 0x241   : > { %p722_p8 = pneg %p721_p7 }
 0x243   : > { %p727_p12 = pnand %p726_p11, %p722_p8 }
 0x245   : > { %730 = shalt.err (!%p727_p12)
}
 0x246   : > { %661 = dma.vmem_to_hbm [thread:$0]  (%p852_p5), %s559_s30, 16, %s928_s14, %s546_s15  }
 0x247 PF: > { %p667_p13 = scmp.ge.s32.totalorder %s765_s29, 2  ;;  %s570_s25 = sand.u32 1, %s753_s26  }
 0x248   : > { %s571_s9 = scalar_lea.sflag [#allocation4], %s570_s25 }
 0x249   : > { %p664_p0 = pnand %p667_p13, %p856_p6 }
 0x24b   : > { %p665_p1 = pneg %p664_p0 }
 0x24d   : > { %748 = dma.done.wait (%p665_p1), %s571_s9, 16  }
 0x24e   : > { %750 = vsyncadd (%p665_p1), %s571_s9, 4294967280  ;;  %p18_p2 = scmp.ge.s32.totalorder %s839_s8, 4   ;;  %s973_s26 = smov %s757_s27 }
 0x24f   : > { %s974_s27 = smov %s761_s28  ;;  %s975_s28 = smov %s850_s11 }
 0x250   : > { %s976_s29 = smov %s839_s8  ;;  %20 = sbr.rel (!%p18_p2) target bundleno = 5 (0x5), region = 83 }
 0x255   :  { %575 = vsyncpa [#allocation4], 1 }
 0x256   :  { %577 = vsyncpa [#allocation4 + $0x1], 1 }

</bundles_post_ra>
